<compile_context>
chip_gen: v7x
topology: tpu7x:2x2x1
jax: 0.10.0
libtpu: 0.0.40
codegen_flags: <defaults>
</compile_context>

<pallas_src>
import jax
import jax.numpy as jnp
from jax.experimental import pallas as pl
from jax.experimental.pallas import tpu as pltpu


def _gather_kernel(jm_ref, x_ref, o_ref):
    # jm_ref: (M,) int32 joint map, resident in SMEM (scalar reads only).
    # x_ref : (B, J, D) full source, resident in VMEM.
    # o_ref : (B, M, D) output, resident in VMEM.
    J = x_ref.shape[1]
    M = o_ref.shape[1]
    # M (number of remapped joints) is small and static -> full unroll.
    for m in range(M):
        idx = jnp.clip(jm_ref[m], 0, J - 1)  # guard: VMEM reads are unchecked
        o_ref[:, pl.ds(m, 1), :] = x_ref[:, pl.ds(idx, 1), :]


def joint_mapper(joints, joint_maps=None, *, force_pallas=False,
                 xla_fallback_bytes=1 << 16):
    """Pallas implementation of JointMapper.forward.

    joints:     (B, J, D) array
    joint_maps: (M,) int array of source-joint indices, or None (identity).
    returns:    (B, M, D) array == joints[:, joint_maps, :]
    """
    if joint_maps is None:
        return joints

    B, J, D = joints.shape
    M = int(joint_maps.shape[0])

    if joint_maps.dtype != jnp.int32:
        joint_maps = joint_maps.astype(jnp.int32)

    # For very small problems a plain XLA gather is strictly cheaper than any
    # kernel launch (this op is pure data movement — no compute unit is ever
    # the bottleneck).
    total_bytes = (B * J * D + B * M * D) * joints.dtype.itemsize
    if (not force_pallas) and total_bytes < xla_fallback_bytes:
        return jnp.take(joints, joint_maps, axis=1)

    # Only raise the scoped VMEM limit if the resident source actually needs
    # it (sized against v7x's 64 MiB physical / 32 MiB default scoped VMEM).
    compiler_params = None
    if total_bytes > (24 << 20):
        compiler_params = pltpu.CompilerParams(
            vmem_limit_bytes=min(total_bytes + (8 << 20), 128 << 20))

    return pl.pallas_call(
        _gather_kernel,
        out_shape=jax.ShapeDtypeStruct((B, M, D), joints.dtype),
        in_specs=[
            pl.BlockSpec(memory_space=pltpu.MemorySpace.SMEM),  # joint_maps
            pl.BlockSpec(memory_space=pltpu.MemorySpace.VMEM),  # joints (whole)
        ],
        out_specs=pl.BlockSpec(memory_space=pltpu.MemorySpace.VMEM),
        compiler_params=compiler_params,
    )(joint_maps, joints)


if __name__ == "__main__":
    key = jax.random.PRNGKey(0)

    # Small shapes consistent with the module: batch=2, J=16 joints, 3D coords.
    B, J, D = 2, 16, 3
    joints = jax.random.normal(key, (B, J, D), dtype=jnp.float32)

    # Deterministic joint map (buffer contents from __init__), M=8 remapped joints.
    joint_maps = jnp.array([0, 5, 3, 7, 2, 1, 15, 8], dtype=jnp.int32)
    M = int(joint_maps.shape[0])

    # Reference: torch.index_select(joints, 1, joint_maps)
    ref = joints[:, joint_maps, :]

    # Pallas path (forced so the kernel is exercised at these toy shapes).
    out = jax.block_until_ready(joint_mapper(joints, joint_maps, force_pallas=True))
    assert out.shape == (B, M, D), out.shape
    assert out.dtype == joints.dtype
    assert jnp.array_equal(out, ref), "mismatch vs reference gather"

    # Default path: tiny shapes route to the XLA gather fallback.
    out_fb = jax.block_until_ready(joint_mapper(joints, joint_maps))
    assert jnp.array_equal(out_fb, ref)

    # Identity path (joint_maps is None) — plain passthrough, no kernel needed.
    out_id = jax.block_until_ready(joint_mapper(joints, None))
    assert jnp.array_equal(out_id, joints)

    print("KERNEL_OK")
</pallas_src>

<mosaic_0001>
module attributes {stable_mosaic.version = 11 : i64} {
  func.func @_gather_kernel(%arg0: memref<8xi32, #tpu.memory_space<smem>>, %arg1: memref<2x16x3xf32, #tpu.memory_space<vmem>>, %arg2: memref<2x8x3xf32, #tpu.memory_space<vmem>>) attributes {dimension_semantics = [], scalar_prefetch = 0 : i64, scratch_operands = 0 : i64, tpu.core_type = #tpu.core_type<tc>} {
    %c0 = arith.constant 0 : index
    %0 = memref.load %arg0[%c0] : memref<8xi32, #tpu.memory_space<smem>>
    %c0_i32 = arith.constant 0 : i32
    %c15_i32 = arith.constant 15 : i32
    %1 = arith.maxsi %c0_i32, %0 : i32
    %2 = arith.minsi %c15_i32, %1 : i32
    %c0_0 = arith.constant 0 : index
    %3 = arith.index_cast %2 : i32 to index
    %c0_1 = arith.constant 0 : index
    %4 = vector.load %arg1[%c0_0, %3, %c0_1] : memref<2x16x3xf32, #tpu.memory_space<vmem>>, vector<2x1x3xf32>
    %c0_2 = arith.constant 0 : index
    %c0_3 = arith.constant 0 : index
    %c0_4 = arith.constant 0 : index
    %5 = vector.load %arg2[%c0_2, %c0_3, %c0_4] : memref<2x8x3xf32, #tpu.memory_space<vmem>>, vector<2x1x3xf32>
    tpu.vector_store %arg2[%c0_2, %c0_3, %c0_4], %4 {strides = array<i32>} : memref<2x8x3xf32, #tpu.memory_space<vmem>>, vector<2x1x3xf32>,
    %c1 = arith.constant 1 : index
    %6 = memref.load %arg0[%c1] : memref<8xi32, #tpu.memory_space<smem>>
    %c0_i32_5 = arith.constant 0 : i32
    %c15_i32_6 = arith.constant 15 : i32
    %7 = arith.maxsi %c0_i32_5, %6 : i32
    %8 = arith.minsi %c15_i32_6, %7 : i32
    %c0_7 = arith.constant 0 : index
    %9 = arith.index_cast %8 : i32 to index
    %c0_8 = arith.constant 0 : index
    %10 = vector.load %arg1[%c0_7, %9, %c0_8] : memref<2x16x3xf32, #tpu.memory_space<vmem>>, vector<2x1x3xf32>
    %c0_9 = arith.constant 0 : index
    %c1_10 = arith.constant 1 : index
    %c0_11 = arith.constant 0 : index
    %11 = vector.load %arg2[%c0_9, %c1_10, %c0_11] : memref<2x8x3xf32, #tpu.memory_space<vmem>>, vector<2x1x3xf32>
    tpu.vector_store %arg2[%c0_9, %c1_10, %c0_11], %10 {strides = array<i32>} : memref<2x8x3xf32, #tpu.memory_space<vmem>>, vector<2x1x3xf32>,
    %c2 = arith.constant 2 : index
    %12 = memref.load %arg0[%c2] : memref<8xi32, #tpu.memory_space<smem>>
    %c0_i32_12 = arith.constant 0 : i32
    %c15_i32_13 = arith.constant 15 : i32
    %13 = arith.maxsi %c0_i32_12, %12 : i32
    %14 = arith.minsi %c15_i32_13, %13 : i32
    %c0_14 = arith.constant 0 : index
    %15 = arith.index_cast %14 : i32 to index
    %c0_15 = arith.constant 0 : index
    %16 = vector.load %arg1[%c0_14, %15, %c0_15] : memref<2x16x3xf32, #tpu.memory_space<vmem>>, vector<2x1x3xf32>
    %c0_16 = arith.constant 0 : index
    %c2_17 = arith.constant 2 : index
    %c0_18 = arith.constant 0 : index
    %17 = vector.load %arg2[%c0_16, %c2_17, %c0_18] : memref<2x8x3xf32, #tpu.memory_space<vmem>>, vector<2x1x3xf32>
    tpu.vector_store %arg2[%c0_16, %c2_17, %c0_18], %16 {strides = array<i32>} : memref<2x8x3xf32, #tpu.memory_space<vmem>>, vector<2x1x3xf32>,
    %c3 = arith.constant 3 : index
    %18 = memref.load %arg0[%c3] : memref<8xi32, #tpu.memory_space<smem>>
    %c0_i32_19 = arith.constant 0 : i32
    %c15_i32_20 = arith.constant 15 : i32
    %19 = arith.maxsi %c0_i32_19, %18 : i32
    %20 = arith.minsi %c15_i32_20, %19 : i32
    %c0_21 = arith.constant 0 : index
    %21 = arith.index_cast %20 : i32 to index
    %c0_22 = arith.constant 0 : index
    %22 = vector.load %arg1[%c0_21, %21, %c0_22] : memref<2x16x3xf32, #tpu.memory_space<vmem>>, vector<2x1x3xf32>
    %c0_23 = arith.constant 0 : index
    %c3_24 = arith.constant 3 : index
    %c0_25 = arith.constant 0 : index
    %23 = vector.load %arg2[%c0_23, %c3_24, %c0_25] : memref<2x8x3xf32, #tpu.memory_space<vmem>>, vector<2x1x3xf32>
    tpu.vector_store %arg2[%c0_23, %c3_24, %c0_25], %22 {strides = array<i32>} : memref<2x8x3xf32, #tpu.memory_space<vmem>>, vector<2x1x3xf32>,
    %c4 = arith.constant 4 : index
    %24 = memref.load %arg0[%c4] : memref<8xi32, #tpu.memory_space<smem>>
    %c0_i32_26 = arith.constant 0 : i32
    %c15_i32_27 = arith.constant 15 : i32
    %25 = arith.maxsi %c0_i32_26, %24 : i32
    %26 = arith.minsi %c15_i32_27, %25 : i32
    %c0_28 = arith.constant 0 : index
    %27 = arith.index_cast %26 : i32 to index
    %c0_29 = arith.constant 0 : index
    %28 = vector.load %arg1[%c0_28, %27, %c0_29] : memref<2x16x3xf32, #tpu.memory_space<vmem>>, vector<2x1x3xf32>
    %c0_30 = arith.constant 0 : index
    %c4_31 = arith.constant 4 : index
    %c0_32 = arith.constant 0 : index
    %29 = vector.load %arg2[%c0_30, %c4_31, %c0_32] : memref<2x8x3xf32, #tpu.memory_space<vmem>>, vector<2x1x3xf32>
    tpu.vector_store %arg2[%c0_30, %c4_31, %c0_32], %28 {strides = array<i32>} : memref<2x8x3xf32, #tpu.memory_space<vmem>>, vector<2x1x3xf32>,
    %c5 = arith.constant 5 : index
    %30 = memref.load %arg0[%c5] : memref<8xi32, #tpu.memory_space<smem>>
    %c0_i32_33 = arith.constant 0 : i32
    %c15_i32_34 = arith.constant 15 : i32
    %31 = arith.maxsi %c0_i32_33, %30 : i32
    %32 = arith.minsi %c15_i32_34, %31 : i32
    %c0_35 = arith.constant 0 : index
    %33 = arith.index_cast %32 : i32 to index
    %c0_36 = arith.constant 0 : index
    %34 = vector.load %arg1[%c0_35, %33, %c0_36] : memref<2x16x3xf32, #tpu.memory_space<vmem>>, vector<2x1x3xf32>
    %c0_37 = arith.constant 0 : index
    %c5_38 = arith.constant 5 : index
    %c0_39 = arith.constant 0 : index
    %35 = vector.load %arg2[%c0_37, %c5_38, %c0_39] : memref<2x8x3xf32, #tpu.memory_space<vmem>>, vector<2x1x3xf32>
    tpu.vector_store %arg2[%c0_37, %c5_38, %c0_39], %34 {strides = array<i32>} : memref<2x8x3xf32, #tpu.memory_space<vmem>>, vector<2x1x3xf32>,
    %c6 = arith.constant 6 : index
    %36 = memref.load %arg0[%c6] : memref<8xi32, #tpu.memory_space<smem>>
    %c0_i32_40 = arith.constant 0 : i32
    %c15_i32_41 = arith.constant 15 : i32
    %37 = arith.maxsi %c0_i32_40, %36 : i32
    %38 = arith.minsi %c15_i32_41, %37 : i32
    %c0_42 = arith.constant 0 : index
    %39 = arith.index_cast %38 : i32 to index
    %c0_43 = arith.constant 0 : index
    %40 = vector.load %arg1[%c0_42, %39, %c0_43] : memref<2x16x3xf32, #tpu.memory_space<vmem>>, vector<2x1x3xf32>
    %c0_44 = arith.constant 0 : index
    %c6_45 = arith.constant 6 : index
    %c0_46 = arith.constant 0 : index
    %41 = vector.load %arg2[%c0_44, %c6_45, %c0_46] : memref<2x8x3xf32, #tpu.memory_space<vmem>>, vector<2x1x3xf32>
    tpu.vector_store %arg2[%c0_44, %c6_45, %c0_46], %40 {strides = array<i32>} : memref<2x8x3xf32, #tpu.memory_space<vmem>>, vector<2x1x3xf32>,
    %c7 = arith.constant 7 : index
    %42 = memref.load %arg0[%c7] : memref<8xi32, #tpu.memory_space<smem>>
    %c0_i32_47 = arith.constant 0 : i32
    %c15_i32_48 = arith.constant 15 : i32
    %43 = arith.maxsi %c0_i32_47, %42 : i32
    %44 = arith.minsi %c15_i32_48, %43 : i32
    %c0_49 = arith.constant 0 : index
    %45 = arith.index_cast %44 : i32 to index
    %c0_50 = arith.constant 0 : index
    %46 = vector.load %arg1[%c0_49, %45, %c0_50] : memref<2x16x3xf32, #tpu.memory_space<vmem>>, vector<2x1x3xf32>
    %c0_51 = arith.constant 0 : index
    %c7_52 = arith.constant 7 : index
    %c0_53 = arith.constant 0 : index
    %47 = vector.load %arg2[%c0_51, %c7_52, %c0_53] : memref<2x8x3xf32, #tpu.memory_space<vmem>>, vector<2x1x3xf32>
    tpu.vector_store %arg2[%c0_51, %c7_52, %c0_53], %46 {strides = array<i32>} : memref<2x8x3xf32, #tpu.memory_space<vmem>>, vector<2x1x3xf32>,
    return
  }
}

</mosaic_0001>

<bundles_post_ra>
// kernel: tpu_custom_call.1
= control target key start
LH: loop header
LB: loop body
LE: loop exit
PB: predicated region body
PF: predicated region fallthrough
CT: control target
= control target key end

     0   :  { %7 = vsyncpa [#allocation3], 0  ;;  %s333_s0 = inlined_call_operand.vmem [shape: s32[8], index: 0, kind: input, shape index: {}]   ;;  %s334_s1 = inlined_call_operand.vmem [shape: f32[2,16,3], index: 1, kind: input, shape index: {}]   ;;  %s335_s2 = inlined_call_operand.vmem [shape: f32[2,8,3], index: 2, kind: output, shape index: {}]  }
   0x1   :  { %s14_s11 = sshll.u32 %s333_s0, 4  ;;  %s15_s11 = int_to_ptr.vmem [resolvable:$true] %s14_s11 }
   0x2   :  { %s182_s12 = scalar_lea.vmem %s15_s11, 16  ;;  %p187_p1 = scmp.lt.s32.totalorder %s15_s11, %s15_s11 }
   0x3   :  { %p183_p0 = scmp.ne.s32.totalorder %s15_s11, %s182_s12  ;;  %p188_p2 = scmp.lt.s32.totalorder %s182_s12, %s182_s12 }
   0x5   :  { %p189_p3 = por %p188_p2, %p187_p1 }
   0x7   :  { %p190_p4 = pnand %p189_p3, %p183_p0 }
   0x9   :  { %193 = shalt.err (!%p190_p4)
}
   0xa   :  { %s196_s13 = smov [#allocation2]  }
   0xb   :  { %17 = dma.vmem_to_smem %s15_s11, 16, %s196_s13, [#allocation3]  }
   0xc   :  { %194 = dma.done.wait [#allocation3], 16  }
   0xd   :  { %195 = vsyncadd [#allocation3], 4294967280 }
   0xe   :  { %23 = sfence }
   0xf   :  { %s24_s14 = sld [smem:[#allocation2]]  ;;  %s123_s15 = sld [smem:[#allocation2 + $0x1]]  ;;  %vm32_vm0 = vcmask 16384  }
  0x10   :  { %s215_s16 = sld [smem:[#allocation2 + $0x2]]  ;;  %s217_s17 = sld [smem:[#allocation2 + $0x3]] }
  0x11   :  { %s219_s0 = sld [smem:[#allocation2 + $0x4]]  ;;  %s221_s18 = sld [smem:[#allocation2 + $0x5]] }
  0x12   :  { %s223_s19 = sld [smem:[#allocation2 + $0x6]]  ;;  %s225_s20 = sld [smem:[#allocation2 + $0x7]] }
  0x15   :  { %p25_p5 = scmp.gt.s32.totalorder %s24_s14, 0  ;;  %p118_p6 = scmp.lt.s32.totalorder %s24_s14, 15 }
  0x16   :  { %p36_p7 = scmp.gt.s32.totalorder %s123_s15, 0  ;;  %p124_p8 = scmp.lt.s32.totalorder %s123_s15, 15 }
  0x17   :  { %s337_s14 = smov (!%p25_p5, %s24_s14), 0  ;;  %p46_p9 = scmp.gt.s32.totalorder %s215_s16, 0 }
  0x18   :  { %s339_s15 = smov (!%p36_p7, %s123_s15), 0  ;;  %s341_s14 = smov (!%p118_p6, %s337_s14), 15 }
  0x19   :  { %s343_s15 = smov (!%p124_p8, %s339_s15), 15  ;;  %s29_s23 = scalar_lea.vmem %s334_s1, %s341_s14 }
  0x1a   :  { %v30_v0 = vld [vmem:[%s29_s23] sm:$0x1]  ;;  %v31_v1 = vld [vmem:[%s29_s23 + $0x10] sm:$0x1]  ;;  %s40_s26 = scalar_lea.vmem %s334_s1, %s343_s15  ;;  %p130_p10 = scmp.lt.s32.totalorder %s215_s16, 15 }
  0x1b   :  { %33 = vst.msk [vmem:[%s335_s2] sm:$0x1] %vm32_vm0, %v30_v0  ;;  %34 = vst.msk [vmem:[%s335_s2 + $0x8] sm:$0x1] %vm32_vm0, %v31_v1  ;;  %v41_v2 = vld [vmem:[%s40_s26] sm:$0x1] }
  0x1c   :  { %v42_v3 = vld [vmem:[%s40_s26 + $0x10] sm:$0x1]  ;;  %s345_s16 = smov (!%p46_p9, %s215_s16), 0  ;;  %43 = vst.msk [vmem:[%s335_s2 + $0x1] sm:$0x1] %vm32_vm0, %v41_v2  ;;  %p56_p11 = scmp.gt.s32.totalorder %s217_s17, 0 }
  0x1d   :  { %44 = vst.msk [vmem:[%s335_s2 + $0x9] sm:$0x1] %vm32_vm0, %v42_v3  ;;  %p136_p12 = scmp.lt.s32.totalorder %s217_s17, 15  ;;  %s347_s16 = smov (!%p130_p10, %s345_s16), 15 }
  0x1e   :  { %s349_s17 = smov (!%p56_p11, %s217_s17), 0  ;;  %s50_s9 = scalar_lea.vmem %s334_s1, %s347_s16 }
  0x1f   :  { %p66_p13 = scmp.gt.s32.totalorder %s219_s0, 0  ;;  %v51_v4 = vld [vmem:[%s50_s9] sm:$0x1]  ;;  %v52_v5 = vld [vmem:[%s50_s9 + $0x10] sm:$0x1]  ;;  %s351_s17 = smov (!%p136_p12, %s349_s17), 15 }
  0x20   :  { %53 = vst.msk [vmem:[%s335_s2 + $0x2] sm:$0x1] %vm32_vm0, %v51_v4  ;;  %54 = vst.msk [vmem:[%s335_s2 + $0xa] sm:$0x1] %vm32_vm0, %v52_v5  ;;  %s60_s16 = scalar_lea.vmem %s334_s1, %s351_s17  ;;  %p142_p0 = scmp.lt.s32.totalorder %s219_s0, 15 }
  0x21   :  { %s67_s14 = scalar_select %p66_p13, %s219_s0, 0  ;;  %v61_v6 = vld [vmem:[%s60_s16] sm:$0x1]  ;;  %v62_v7 = vld [vmem:[%s60_s16 + $0x10] sm:$0x1] }
  0x22   :  { %p76_p1 = scmp.gt.s32.totalorder %s221_s18, 0  ;;  %p148_p2 = scmp.lt.s32.totalorder %s221_s18, 15  ;;  %63 = vst.msk [vmem:[%s335_s2 + $0x3] sm:$0x1] %vm32_vm0, %v61_v6  ;;  %64 = vst.msk [vmem:[%s335_s2 + $0xb] sm:$0x1] %vm32_vm0, %v62_v7 }
  0x23   :  { %s353_s14 = smov (!%p142_p0, %s67_s14), 15  ;;  %p86_p3 = scmp.gt.s32.totalorder %s223_s19, 0 }
  0x24   :  { %s355_s18 = smov (!%p76_p1, %s221_s18), 0  ;;  %s70_s26 = scalar_lea.vmem %s334_s1, %s353_s14 }
  0x25   :  { %v71_v8 = vld [vmem:[%s70_s26] sm:$0x1]  ;;  %v72_v9 = vld [vmem:[%s70_s26 + $0x10] sm:$0x1]  ;;  %s357_s18 = smov (!%p148_p2, %s355_s18), 15  ;;  %p154_p4 = scmp.lt.s32.totalorder %s223_s19, 15 }
  0x26   :  { %73 = vst.msk [vmem:[%s335_s2 + $0x4] sm:$0x1] %vm32_vm0, %v71_v8  ;;  %74 = vst.msk [vmem:[%s335_s2 + $0xc] sm:$0x1] %vm32_vm0, %v72_v9  ;;  %s87_s3 = scalar_select %p86_p3, %s223_s19, 0 }
  0x27   :  { %s80_s6 = scalar_lea.vmem %s334_s1, %s357_s18  ;;  %p96_p5 = scmp.gt.s32.totalorder %s225_s20, 0 }
  0x28   :  { %v81_v10 = vld [vmem:[%s80_s6] sm:$0x1]  ;;  %v82_v11 = vld [vmem:[%s80_s6 + $0x10] sm:$0x1]  ;;  %p160_p6 = scmp.lt.s32.totalorder %s225_s20, 15  ;;  %s359_s3 = smov (!%p154_p4, %s87_s3), 15 }
  0x29   :  { %83 = vst.msk [vmem:[%s335_s2 + $0x5] sm:$0x1] %vm32_vm0, %v81_v10  ;;  %84 = vst.msk [vmem:[%s335_s2 + $0xd] sm:$0x1] %vm32_vm0, %v82_v11  ;;  %s361_s20 = smov (!%p96_p5, %s225_s20), 0  ;;  %s90_s18 = scalar_lea.vmem %s334_s1, %s359_s3 }
  0x2a   :  { %v91_v12 = vld [vmem:[%s90_s18] sm:$0x1]  ;;  %v92_v13 = vld [vmem:[%s90_s18 + $0x10] sm:$0x1]  ;;  %s363_s20 = smov (!%p160_p6, %s361_s20), 15 }
  0x2b   :  { %93 = vst.msk [vmem:[%s335_s2 + $0x6] sm:$0x1] %vm32_vm0, %v91_v12  ;;  %94 = vst.msk [vmem:[%s335_s2 + $0xe] sm:$0x1] %vm32_vm0, %v92_v13  ;;  %s100_s22 = scalar_lea.vmem %s334_s1, %s363_s20 }
  0x2c   :  { %v101_v14 = vld [vmem:[%s100_s22] sm:$0x1]  ;;  %v102_v15 = vld [vmem:[%s100_s22 + $0x10] sm:$0x1] }
  0x2d   :  { %103 = vst.msk [vmem:[%s335_s2 + $0x7] sm:$0x1] %vm32_vm0, %v101_v14  ;;  %104 = vst.msk [vmem:[%s335_s2 + $0xf] sm:$0x1] %vm32_vm0, %v102_v15 }
  0x2e   :  { %109 = vsyncpa [#allocation3], 1 }

</bundles_post_ra>
